<compile_context>
chip_gen: v5e
topology: v5e:2x2
jax: 0.10.0
libtpu: 0.0.40
codegen_flags: <defaults>
</compile_context>

<pallas_src>
import numpy as np
import jax
import jax.numpy as jnp
from jax.experimental import pallas as pl
from jax.experimental.pallas import tpu as pltpu


# ----------------------------------------------------------------------------
# Pallas kernel: filtration extension (vertex values -> edge/triangle values)
# Packed output layout (5, n, n):
#   [0] eh = min(b[i,j], b[i,j+1])          horizontal edge
#   [1] ev = min(b[i,j], b[i+1,j])          vertical   edge
#   [2] ed = min(b[i,j], b[i+1,j+1])        diagonal   edge
#   [3] tu = min(eh, b[i+1,j+1])            upper triangle (i,j),(i,j+1),(i+1,j+1)
#   [4] tl = min(ev, b[i+1,j+1])            lower triangle (i,j),(i+1,j),(i+1,j+1)
# Last row / last column of the shifted operands are invalid (filled with 0 by the
# permutation shift) and are sliced off before the host pairing, as before.
# ----------------------------------------------------------------------------
def _filtration_kernel(b_ref, out_ref):
    b = b_ref[...]                                    # (n, n) vertex values beta[i, j]
    n = b.shape[0]

    # Static shift-by-one built on-chip: 0/1 permutation matrices via iota compare,
    # applied with exact MXU matmuls (one 1.0*x term + zeros -> bit-exact shift).
    r = jax.lax.broadcasted_iota(jnp.int32, (n, n), 0)       # row index
    c = jax.lax.broadcasted_iota(jnp.int32, (n, n), 1)       # col index
    s_col = (r == c + 1).astype(jnp.float32)                 # (b @ s_col)[i,j] = b[i, j+1]
    s_row = (c == r + 1).astype(jnp.float32)                 # (s_row @ b)[i,j] = b[i+1, j]

    br = jnp.dot(b, s_col, preferred_element_type=jnp.float32)    # beta[i, j+1]
    bd = jnp.dot(s_row, b, preferred_element_type=jnp.float32)    # beta[i+1, j]
    bdr = jnp.dot(bd, s_col, preferred_element_type=jnp.float32)  # beta[i+1, j+1]

    eh = jnp.minimum(b, br)
    ev = jnp.minimum(b, bd)
    ed = jnp.minimum(b, bdr)

    out_ref[0] = eh
    out_ref[1] = ev
    out_ref[2] = ed
    out_ref[3] = jnp.minimum(eh, bdr)
    out_ref[4] = jnp.minimum(ev, bdr)


def filtration_values(beta_np):
    """Single pallas_call: beta (n, n) f32 -> packed filtration values (5, n, n) f32."""
    n = beta_np.shape[0]
    vspec = pl.BlockSpec(memory_space=pltpu.MemorySpace.VMEM)  # whole array in VMEM (n=16 is tiny)
    # TODO(synk): if n is ever scaled up, switch to a row-tiled parallel grid with
    # lane-dense (>=128-wide) output tiles and an explicit vmem_limit_bytes.
    return pl.pallas_call(
        _filtration_kernel,
        out_shape=jax.ShapeDtypeStruct((5, n, n), jnp.float32),
        in_specs=[vspec],
        out_specs=vspec,
    )(jnp.asarray(beta_np, jnp.float32))


# ----------------------------------------------------------------------------
# Host: persistence pairing (superlevel filtration on the Freudenthal complex)
# TODO(synk): persistence pairing (union-find / boundary-matrix reduction) is
# sequential & data-dependent -- no clean Pallas equivalent; computed on host.
# ----------------------------------------------------------------------------
def _persistence_bar_lengths(beta_np, eh, ev, ed, tu, tl):
    n = beta_np.shape[0]
    V = n * n
    vid = lambda i, j: i * n + j
    verts_val = beta_np.reshape(-1).astype(np.float64)

    edges = []  # (value, (u, v))
    for i in range(n):
        for j in range(n - 1):
            edges.append((float(eh[i, j]), (vid(i, j), vid(i, j + 1))))
    for i in range(n - 1):
        for j in range(n):
            edges.append((float(ev[i, j]), (vid(i, j), vid(i + 1, j))))
    for i in range(n - 1):
        for j in range(n - 1):
            edges.append((float(ed[i, j]), (vid(i, j), vid(i + 1, j + 1))))

    edge_index = {}
    for k, (_, (u, v)) in enumerate(edges):
        edge_index[(min(u, v), max(u, v))] = k

    def eidx(u, v):
        return edge_index[(min(u, v), max(u, v))]

    tris = []  # (value, (e0, e1, e2))
    for i in range(n - 1):
        for j in range(n - 1):
            a, b, c, d = vid(i, j), vid(i, j + 1), vid(i + 1, j), vid(i + 1, j + 1)
            tris.append((float(tu[i, j]), (eidx(a, b), eidx(b, d), eidx(a, d))))
            tris.append((float(tl[i, j]), (eidx(a, c), eidx(c, d), eidx(a, d))))

    # ---- H0: union-find, superlevel order (decreasing value; faces before cofaces on ties)
    order0 = sorted(
        [(verts_val[v], 0, v) for v in range(V)]
        + [(val, 1, k) for k, (val, _) in enumerate(edges)],
        key=lambda t: (-t[0], t[1], t[2]))
    parent = list(range(V))
    birth = [0.0] * V

    def find(x):
        while parent[x] != x:
            parent[x] = parent[parent[x]]
            x = parent[x]
        return x

    bars0 = []
    for val, dim, idx in order0:
        if dim == 0:
            birth[idx] = val
        else:
            u, v = edges[idx][1]
            ru, rv = find(u), find(v)
            if ru == rv:
                continue
            if birth[ru] < birth[rv]:
                ru, rv = rv, ru
            bars0.append(birth[rv] - val)        # length = birth - death (>= 0)
            parent[rv] = ru
    # the surviving component is the essential H0 bar (infinite length -> contributes 0)

    # ---- H1: Z/2 boundary-matrix reduction over (edges, triangles)
    edge_order = sorted(range(len(edges)), key=lambda k: (-edges[k][0], k))
    edge_rank = {k: r for r, k in enumerate(edge_order)}
    tri_order = sorted(range(len(tris)), key=lambda k: (-tris[k][0], k))

    low_to_col, cols = {}, {}
    bars1 = []
    for t in tri_order:
        col = set(edge_rank[e] for e in tris[t][1])
        while col:
            piv = max(col)
            if piv not in low_to_col:
                break
            col ^= cols[low_to_col[piv]]
        if col:
            piv = max(col)
            low_to_col[piv] = t
            cols[t] = col
            bars1.append(edges[edge_order[piv]][0] - tris[t][0])  # birth - death
        # a fully cancelling column would create H2 -- impossible on a planar grid

    return (np.asarray(bars0, np.float64), np.asarray(bars1, np.float64))


# ----------------------------------------------------------------------------
# TopLoss.forward
# ----------------------------------------------------------------------------
def top_loss(beta):
    # Keep the host copy of beta (free if beta is already a numpy array); never
    # download beta from the device.
    beta_np = np.asarray(beta, dtype=np.float32)
    n = beta_np.shape[0]

    packed = filtration_values(beta_np)              # one pallas_call, one packed output
    packed = np.asarray(jax.device_get(packed))      # single D2H transfer
    eh, ev, ed, tu, tl = packed[0], packed[1], packed[2], packed[3], packed[4]

    bars0, bars1 = _persistence_bar_lengths(
        beta_np,
        eh[:, :n - 1], ev[:n - 1, :], ed[:n - 1, :n - 1],
        tu[:n - 1, :n - 1], tl[:n - 1, :n - 1])

    # Barcode-length reductions on host (a few hundred floats; a device kernel here
    # would be pure launch/transfer overhead).
    s0 = float(np.sum(bars0)) if bars0.size else 0.0          # SumBarcodeLengths(dim=0)
    s1 = float(np.sum(bars1)) if bars1.size else 0.0
    m1 = float(np.max(bars1)) if bars1.size else 0.0          # skip=1 -> drop longest bar
    return jnp.float32(s0 + (s1 - m1))                        # PartialSum(dim=1, skip=1) + Sum(dim=0)


if __name__ == "__main__":
    n = 16  # small grid, consistent with TopLoss(size=(n, n)) applied to an (n, n) beta
    ii = np.arange(n, dtype=np.float64)[:, None]
    jj = np.arange(n, dtype=np.float64)[None, :]
    rr = np.sqrt((ii - n / 2.0) ** 2 + (jj - n / 2.0) ** 2)
    circle = np.exp(-(rr - n / 3.0) ** 2 / (n * 2))                    # gen_circle(n)
    noise = np.asarray(jax.random.normal(jax.random.PRNGKey(0), (n, n), dtype=jnp.float32))
    beta = (circle + 0.05 * noise).astype(np.float32)                  # noisy circle, kept on host

    loss = top_loss(beta)
    jax.block_until_ready(loss)
    print("KERNEL_OK")
</pallas_src>

<mosaic_0001>
module attributes {stable_mosaic.version = 11 : i64} {
  func.func @_filtration_kernel(%arg0: memref<16x16xf32, #tpu.memory_space<vmem>>, %arg1: memref<5x16x16xf32, #tpu.memory_space<vmem>>) attributes {dimension_semantics = [], scalar_prefetch = 0 : i64, scratch_operands = 0 : i64, tpu.core_type = #tpu.core_type<tc>} {
    %c0 = arith.constant 0 : index
    %c0_0 = arith.constant 0 : index
    %0 = vector.load %arg0[%c0, %c0_0] : memref<16x16xf32, #tpu.memory_space<vmem>>, vector<16x16xf32>
    %1 = tpu.iota {dimensions = array<i32: 0>} : vector<16x16xi32>
    %2 = tpu.iota {dimensions = array<i32: 1>} : vector<16x16xi32>
    %c1_i32 = arith.constant 1 : i32
    %3 = vector.broadcast %c1_i32 : i32 to vector<16x16xi32>
    %4 = arith.addi %2, %3 : vector<16x16xi32>
    %5 = arith.cmpi eq, %1, %4 : vector<16x16xi32>
    %6 = arith.extui %5 : vector<16x16xi1> to vector<16x16xi32>
    %7 = arith.sitofp %6 : vector<16x16xi32> to vector<16x16xf32>
    %c1_i32_1 = arith.constant 1 : i32
    %8 = vector.broadcast %c1_i32_1 : i32 to vector<16x16xi32>
    %9 = arith.addi %1, %8 : vector<16x16xi32>
    %10 = arith.cmpi eq, %2, %9 : vector<16x16xi32>
    %11 = arith.extui %10 : vector<16x16xi1> to vector<16x16xi32>
    %12 = arith.sitofp %11 : vector<16x16xi32> to vector<16x16xf32>
    %cst = arith.constant dense<0.000000e+00> : vector<16x16xf32>
    %13 = tpu.matmul %0, %7, %cst {dimension_numbers = #tpu.dot_dimension_numbers<[1], [0], [0], [1], [0, 0, 1, 1], [], []>} : vector<16x16xf32>, vector<16x16xf32>, vector<16x16xf32> -> vector<16x16xf32>
    %cst_2 = arith.constant dense<0.000000e+00> : vector<16x16xf32>
    %14 = tpu.matmul %12, %0, %cst_2 {dimension_numbers = #tpu.dot_dimension_numbers<[1], [0], [0], [1], [0, 0, 1, 1], [], []>} : vector<16x16xf32>, vector<16x16xf32>, vector<16x16xf32> -> vector<16x16xf32>
    %cst_3 = arith.constant dense<0.000000e+00> : vector<16x16xf32>
    %15 = tpu.matmul %14, %7, %cst_3 {dimension_numbers = #tpu.dot_dimension_numbers<[1], [0], [0], [1], [0, 0, 1, 1], [], []>} : vector<16x16xf32>, vector<16x16xf32>, vector<16x16xf32> -> vector<16x16xf32>
    %16 = arith.minimumf %0, %13 : vector<16x16xf32>
    %17 = arith.minimumf %0, %14 : vector<16x16xf32>
    %18 = arith.minimumf %0, %15 : vector<16x16xf32>
    %c0_4 = arith.constant 0 : index
    %c0_5 = arith.constant 0 : index
    %c0_6 = arith.constant 0 : index
    %19 = vector.load %arg1[%c0_4, %c0_5, %c0_6] : memref<5x16x16xf32, #tpu.memory_space<vmem>>, vector<1x16x16xf32>
    %20 = vector.shape_cast %19 : vector<1x16x16xf32> to vector<16x16xf32>
    %21 = vector.shape_cast %16 : vector<16x16xf32> to vector<1x16x16xf32>
    tpu.vector_store %arg1[%c0_4, %c0_5, %c0_6], %21 {strides = array<i32>} : memref<5x16x16xf32, #tpu.memory_space<vmem>>, vector<1x16x16xf32>,
    %c1 = arith.constant 1 : index
    %c0_7 = arith.constant 0 : index
    %c0_8 = arith.constant 0 : index
    %22 = vector.load %arg1[%c1, %c0_7, %c0_8] : memref<5x16x16xf32, #tpu.memory_space<vmem>>, vector<1x16x16xf32>
    %23 = vector.shape_cast %22 : vector<1x16x16xf32> to vector<16x16xf32>
    %24 = vector.shape_cast %17 : vector<16x16xf32> to vector<1x16x16xf32>
    tpu.vector_store %arg1[%c1, %c0_7, %c0_8], %24 {strides = array<i32>} : memref<5x16x16xf32, #tpu.memory_space<vmem>>, vector<1x16x16xf32>,
    %c2 = arith.constant 2 : index
    %c0_9 = arith.constant 0 : index
    %c0_10 = arith.constant 0 : index
    %25 = vector.load %arg1[%c2, %c0_9, %c0_10] : memref<5x16x16xf32, #tpu.memory_space<vmem>>, vector<1x16x16xf32>
    %26 = vector.shape_cast %25 : vector<1x16x16xf32> to vector<16x16xf32>
    %27 = vector.shape_cast %18 : vector<16x16xf32> to vector<1x16x16xf32>
    tpu.vector_store %arg1[%c2, %c0_9, %c0_10], %27 {strides = array<i32>} : memref<5x16x16xf32, #tpu.memory_space<vmem>>, vector<1x16x16xf32>,
    %28 = arith.minimumf %16, %15 : vector<16x16xf32>
    %c3 = arith.constant 3 : index
    %c0_11 = arith.constant 0 : index
    %c0_12 = arith.constant 0 : index
    %29 = vector.load %arg1[%c3, %c0_11, %c0_12] : memref<5x16x16xf32, #tpu.memory_space<vmem>>, vector<1x16x16xf32>
    %30 = vector.shape_cast %29 : vector<1x16x16xf32> to vector<16x16xf32>
    %31 = vector.shape_cast %28 : vector<16x16xf32> to vector<1x16x16xf32>
    tpu.vector_store %arg1[%c3, %c0_11, %c0_12], %31 {strides = array<i32>} : memref<5x16x16xf32, #tpu.memory_space<vmem>>, vector<1x16x16xf32>,
    %32 = arith.minimumf %17, %15 : vector<16x16xf32>
    %c4 = arith.constant 4 : index
    %c0_13 = arith.constant 0 : index
    %c0_14 = arith.constant 0 : index
    %33 = vector.load %arg1[%c4, %c0_13, %c0_14] : memref<5x16x16xf32, #tpu.memory_space<vmem>>, vector<1x16x16xf32>
    %34 = vector.shape_cast %33 : vector<1x16x16xf32> to vector<16x16xf32>
    %35 = vector.shape_cast %32 : vector<16x16xf32> to vector<1x16x16xf32>
    tpu.vector_store %arg1[%c4, %c0_13, %c0_14], %35 {strides = array<i32>} : memref<5x16x16xf32, #tpu.memory_space<vmem>>, vector<1x16x16xf32>,
    return
  }
}

</mosaic_0001>

<bundles_post_ra>
// kernel: tpu_custom_call.1
= control target key start
LH: loop header
LB: loop body
LE: loop exit
PB: predicated region body
PF: predicated region fallthrough
CT: control target
= control target key end

     0   :  { %6 = vsyncpa [#allocation3], 0  ;;  %s296_s0 = inlined_call_operand.hbm [shape: f32[16,16], index: 0, kind: input, shape index: {}]   ;;  %s297_s1 = inlined_call_operand.hbm [shape: f32[5,16,16], index: 1, kind: output, shape index: {}]  }
   0x1   :  { %7 = vsyncpa [#allocation4], 0  ;;  %s12_s8 = sshll.u32 %s296_s0, 4  ;;  %s252_s9 = smov [#allocation2]   ;;  %s13_s8 = int_to_ptr.hbm [resolvable:$true] %s12_s8 }
   0x2   :  { %s14_s10 = sshll.u32 %s252_s9, 4  ;;  %s253_s11 = smov 128   ;;  %s15_s10 = int_to_ptr.vmem [resolvable:$true] %s14_s10 }
   0x3   :  { %s254_s12 = smov 8  }
   0x4   :  { %20 = dma.hbm_to_vmem [thread:$0]  %s13_s8, 256, %s15_s10, [#allocation3], %s253_s11, %s253_s11, %s254_s12  }
   0x5   :  { %248 = dma.done.wait [#allocation3], 256  }
   0x6   :  { %249 = vsyncadd [#allocation3], 4294967040  ;;  %v27_v0 = vlaneseq  ;;  %v26_v6 = vld [vmem:[#allocation2 + $0x8] sm:$0xff]  ;;  %v25_v7 = vld [vmem:[#allocation2] sm:$0xff]  ;;  %v255_v8 = vmov 1.0   ;;  %v256_v9 = vmov 0.0  }
   0x7   :  { %97 = vmatpush.msra.mxu1 %v26_v6  ;;  %vm47_vm2 = vcmask 130048   ;;  %s257_s0 = smov [#allocation5]   ;;  %s165_s16 = sshll.u32 %s297_s1, 4  ;;  %s166_s16 = int_to_ptr.hbm [resolvable:$true] %s165_s16 }
   0x8   :  { %v28_v1 = vshrl.u32 %v27_v0, 7  ;;  %v31_v2 = vand.u32 127, %v27_v0  ;;  %s163_s13 = sshll.u32 %s257_s0, 4  ;;  %s164_s13 = int_to_ptr.vmem [resolvable:$true] %s163_s13 }
   0x9   :  { %98 = vmatpush.msra.mxu1 %v25_v7 }
   0xa   :  { %v39_v3 = vadd.s32 1, %v28_v1  ;;  %v29_v4 = vadd.s32 8, %v28_v1  ;;  %v32_v5 = vadd.s32 1, %v31_v2 }
   0xc   :  { %vm41_vm0 = vcmp.eq.s32.totalorder %v31_v2, %v39_v3  ;;  %vm34_vm1 = vcmp.eq.s32.totalorder %v29_v4, %v32_v5  ;;  %v40_v11 = vadd.s32 1, %v29_v4  ;;  %vm33_vm4 = vcmp.eq.s32.totalorder %v28_v1, %v32_v5 }
   0xd   :  { %188 = vmatpush.msk.msra.mxu2 %vm34_vm1, %v255_v8  ;;  %182 = vmatpush.msk.msra.mxu0 %vm34_vm1, %v255_v8  ;;  %v180_v10 = vsel %vm41_vm0, 1.0, %v256_v9 }
   0xe   :  { %192 = vmatpush.msk.msra.mxu3 %vm34_vm1, %v255_v8  ;;  %186 = vmatmul.msk.f32.vlgmr.msra.gmra.mxu1 %vm47_vm2, %v180_v10  ;;  %vm42_vm3 = vcmp.eq.s32.totalorder %v31_v2, %v40_v11 }
   0xf   :  { %v181_v12 = vsel %vm42_vm3, 1.0, %v256_v9  ;;  %189 = vmatpush.msk.msra.mxu2 %vm33_vm4, %v255_v8  ;;  %183 = vmatpush.msk.msra.mxu0 %vm33_vm4, %v255_v8 }
  0x10   :  { %184 = vmatmul.msk.f32.vlgmr.msra.gmra.mxu0 %vm47_vm2, %v25_v7  ;;  %193 = vmatpush.msk.msra.mxu3 %vm33_vm4, %v255_v8 }
  0x11   :  { %185 = vmatmul.msk.f32.vlgmr.msra.gmra.mxu3 %vm47_vm2, %v26_v6 }
  0x16   :  { %187 = vmatmul.msk.f32.gmra.mxu1 %vm47_vm2, %v181_v12 }
  0x8b   :  { %v100_v13 = vpop.f32.mrf.mxu1 }
  0x8c   :  { %v137_v14 = vmin.f32 %v25_v7, %v100_v13  ;;  %190 = vmatmul.msk.f32.vlgmr.msra.gmra.mxu2 %vm47_vm2, %v100_v13 }
  0x8d   :  { %v71_v17 = vpop.f32.mrf.mxu0 }
  0x8e   :  { %144 = vst.msk [vmem:[#allocation5 + $0x10] sm:$0xff] %vm47_vm2, %v137_v14  ;;  %v135_v18 = vmin.f32 %v25_v7, %v71_v17 }
  0x90   :  { %141 = vst.msk [vmem:[#allocation5] sm:$0xff] %vm47_vm2, %v135_v18 }
  0x93   :  { %v103_v15 = vpop.f32.mrf.mxu1 }
  0x94   :  { %v138_v16 = vmin.f32 %v26_v6, %v103_v15  ;;  %191 = vmatmul.msk.f32.gmra.mxu2 %vm47_vm2, %v103_v15  ;;  %v74_v19 = vpop.f32.mrf.mxu3 }
  0x95   :  { %v136_v20 = vmin.f32 %v26_v6, %v74_v19 }
  0x96   :  { %145 = vst.msk [vmem:[#allocation5 + $0x18] sm:$0xff] %vm47_vm2, %v138_v16 }
  0x97   :  { %142 = vst.msk [vmem:[#allocation5 + $0x8] sm:$0xff] %vm47_vm2, %v136_v20 }
 0x10f   :  { %v129_v21 = vpop.f32.mrf.mxu2 }
 0x110   :  { %v139_v22 = vmin.f32 %v25_v7, %v129_v21  ;;  %v149_v23 = vmin.f32 %v135_v18, %v129_v21  ;;  %v154_v24 = vmin.f32 %v137_v14, %v129_v21 }
 0x112   :  { %147 = vst.msk [vmem:[#allocation5 + $0x20] sm:$0xff] %vm47_vm2, %v139_v22 }
 0x113   :  { %152 = vst.msk [vmem:[#allocation5 + $0x30] sm:$0xff] %vm47_vm2, %v149_v23 }
 0x114   :  { %157 = vst.msk [vmem:[#allocation5 + $0x40] sm:$0xff] %vm47_vm2, %v154_v24 }
 0x117   :  { %v132_v25 = vpop.f32.mrf.mxu2 }
 0x118   :  { %v140_v26 = vmin.f32 %v26_v6, %v132_v25  ;;  %v150_v27 = vmin.f32 %v136_v20, %v132_v25  ;;  %v155_v28 = vmin.f32 %v138_v16, %v132_v25 }
 0x11a   :  { %148 = vst.msk [vmem:[#allocation5 + $0x28] sm:$0xff] %vm47_vm2, %v140_v26 }
 0x11b   :  { %153 = vst.msk [vmem:[#allocation5 + $0x38] sm:$0xff] %vm47_vm2, %v150_v27 }
 0x11c   :  { %158 = vst.msk [vmem:[#allocation5 + $0x48] sm:$0xff] %vm47_vm2, %v155_v28 }
 0x11d   :  { %171 = dma.vmem_to_hbm [thread:$0]  %s164_s13, 1280, %s166_s16, [#allocation4], %s253_s11, %s253_s11, %s254_s12  }
 0x11e   :  { %250 = dma.done.wait [#allocation4], 1280  }
 0x11f   :  { %251 = vsyncadd [#allocation4], 4294966016 }
 0x120   :  { %176 = vsyncpa [#allocation3], 1 }
 0x121   :  { %177 = vsyncpa [#allocation4], 1 }

</bundles_post_ra>
